<compile_context>
chip_gen: v7x
topology: tpu7x:2x2x1
jax: 0.10.0
libtpu: 0.0.40
codegen_flags: <defaults>
</compile_context>

<pallas_src>
import functools

import jax
import jax.numpy as jnp
from jax.experimental import pallas as pl
from jax.experimental.pallas import tpu as pltpu

# ---- model dims -------------------------------------------------------------
D_IN, D_H1, D_H2, D_OUT = 108, 50, 10, 2

# ---- packed weight-slab layout (row starts are multiples of 8; all at lane 0) ----
_W1_R0, _W2_R0, _W3_R0 = 0, 112, 168
_B1_R, _B2_R, _B3_R = 184, 192, 200
_SLAB_ROWS, _SLAB_COLS = 208, 128

TILE_B = 1024  # rows per grid step for large batches


def _round_up(n, m):
    return ((n + m - 1) // m) * m


def _mlp_kernel(x_ref, w_ref, o_ref):
    """Fused forward for one batch tile: relu(relu(relu(x@W1+b1)@W2+b2)@W3+b3)."""
    x = x_ref[...]                                    # (TB, 108)

    w1 = w_ref[_W1_R0:_W1_R0 + D_IN, 0:D_H1]          # (108, 50)
    b1 = w_ref[_B1_R:_B1_R + 1, 0:D_H1]               # (1, 50)
    h1 = jnp.maximum(
        jnp.dot(x, w1, preferred_element_type=jnp.float32) + b1, 0.0)

    w2 = w_ref[_W2_R0:_W2_R0 + D_H1, 0:D_H2]          # (50, 10)
    b2 = w_ref[_B2_R:_B2_R + 1, 0:D_H2]               # (1, 10)
    h2 = jnp.maximum(
        jnp.dot(h1, w2, preferred_element_type=jnp.float32) + b2, 0.0)

    w3 = w_ref[_W3_R0:_W3_R0 + D_H2, 0:D_OUT]         # (10, 2)
    b3 = w_ref[_B3_R:_B3_R + 1, 0:D_OUT]              # (1, 2)
    # NOTE: final ReLU kept on purpose — the PyTorch spec applies F.relu(self.fc3(x)).
    h3 = jnp.maximum(
        jnp.dot(h2, w3, preferred_element_type=jnp.float32) + b3, 0.0)

    o_ref[...] = h3.astype(o_ref.dtype)


def pack_params(params):
    """Pack w1,b1,w2,b2,w3,b3 into a single (208, 128) f32 slab (call once at init)."""
    slab = jnp.zeros((_SLAB_ROWS, _SLAB_COLS), jnp.float32)
    slab = slab.at[_W1_R0:_W1_R0 + D_IN, 0:D_H1].set(params["w1"])
    slab = slab.at[_W2_R0:_W2_R0 + D_H1, 0:D_H2].set(params["w2"])
    slab = slab.at[_W3_R0:_W3_R0 + D_H2, 0:D_OUT].set(params["w3"])
    slab = slab.at[_B1_R, 0:D_H1].set(params["b1"].reshape(D_H1))
    slab = slab.at[_B2_R, 0:D_H2].set(params["b2"].reshape(D_H2))
    slab = slab.at[_B3_R, 0:D_OUT].set(params["b3"].reshape(D_OUT))
    return slab


@functools.partial(jax.jit, static_argnames=("tile_b",))
def net_adult_forward(x, slab, *, tile_b=TILE_B):
    """x: (B, 108) f32; slab: packed params from pack_params()."""
    B = x.shape[0]
    tb = min(tile_b, _round_up(B, 8))     # never allocate a tile bigger than needed
    Bp = _round_up(B, tb)
    if Bp != B:                           # pad ragged batch; extra rows sliced off below
        x = jnp.pad(x, ((0, Bp - B), (0, 0)))

    out = pl.pallas_call(
        _mlp_kernel,
        out_shape=jax.ShapeDtypeStruct((Bp, D_OUT), jnp.float32),
        grid=(Bp // tb,),
        in_specs=[
            pl.BlockSpec((tb, D_IN), lambda i: (i, 0)),                 # x: batch-tiled
            pl.BlockSpec((_SLAB_ROWS, _SLAB_COLS), lambda i: (0, 0)),   # weights: resident
        ],
        out_specs=pl.BlockSpec((tb, D_OUT), lambda i: (i, 0)),
        compiler_params=pltpu.CompilerParams(
            dimension_semantics=("parallel",)),   # shard batch tiles across TCs on v7x
    )(x, slab)
    return out[:B]


def init_params(key):
    """Deterministic init mimicking PyTorch nn.Linear defaults (uniform +/- 1/sqrt(fan_in))."""
    dims = [(D_IN, D_H1), (D_H1, D_H2), (D_H2, D_OUT)]
    params = {}
    for i, (fan_in, fan_out) in enumerate(dims, start=1):
        key, kw, kb = jax.random.split(key, 3)
        bound = 1.0 / jnp.sqrt(float(fan_in))
        # stored as (in, out) == PyTorch weight (out, in) transposed
        params[f"w{i}"] = jax.random.uniform(
            kw, (fan_in, fan_out), jnp.float32, -bound, bound)
        params[f"b{i}"] = jax.random.uniform(
            kb, (1, fan_out), jnp.float32, -bound, bound)
    return params


def _reference_forward(x, params):
    h = jnp.maximum(x @ params["w1"] + params["b1"], 0.0)
    h = jnp.maximum(h @ params["w2"] + params["b2"], 0.0)
    h = jnp.maximum(h @ params["w3"] + params["b3"], 0.0)
    return h


if __name__ == "__main__":
    key = jax.random.PRNGKey(0)
    key, kx1, kx2 = jax.random.split(key, 3)
    params = init_params(key)
    slab = pack_params(params)

    # Small-batch check (single grid step).
    B = 8
    x = jax.random.normal(kx1, (B, D_IN), jnp.float32)
    out = jax.block_until_ready(net_adult_forward(x, slab))
    ref = _reference_forward(x, params)
    assert out.shape == (B, D_OUT), out.shape
    assert jnp.allclose(out, ref, atol=1e-5, rtol=1e-5), "mismatch vs reference (B=8)"

    # Multi-tile + ragged-batch check (exercises the grid, pipelining and padding path).
    B2 = 200
    x2 = jax.random.normal(kx2, (B2, D_IN), jnp.float32)
    out2 = jax.block_until_ready(net_adult_forward(x2, slab, tile_b=64))
    ref2 = _reference_forward(x2, params)
    assert out2.shape == (B2, D_OUT), out2.shape
    assert jnp.allclose(out2, ref2, atol=1e-5, rtol=1e-5), "mismatch vs reference (B=200)"

    print("KERNEL_OK")
</pallas_src>

<mosaic_0001>
module attributes {stable_mosaic.version = 11 : i64} {
  func.func @_mlp_kernel(%arg0: i32, %arg1: memref<8x108xf32, #tpu.memory_space<vmem>>, %arg2: memref<208x128xf32, #tpu.memory_space<vmem>>, %arg3: memref<8x2xf32, #tpu.memory_space<vmem>>) attributes {dimension_semantics = [#tpu.dimension_semantics<parallel>], iteration_bounds = array<i64: 1>, scalar_prefetch = 0 : i64, scratch_operands = 0 : i64, tpu.core_type = #tpu.core_type<tc>, window_params = [{transform_indices = @transform_0, window_bounds = array<i64: 8, 108>}, {pipeline_mode = #tpu.pipeline_mode<synchronous>, transform_indices = @transform_1, window_bounds = array<i64: 208, 128>}, {transform_indices = @transform_2, window_bounds = array<i64: 8, 2>}]} {
    %c0 = arith.constant 0 : index
    %c0_0 = arith.constant 0 : index
    %0 = vector.load %arg1[%c0, %c0_0] : memref<8x108xf32, #tpu.memory_space<vmem>>, vector<8x108xf32>
    %c0_1 = arith.constant 0 : index
    %c0_2 = arith.constant 0 : index
    %1 = vector.load %arg2[%c0_1, %c0_2] : memref<208x128xf32, #tpu.memory_space<vmem>>, vector<108x50xf32>
    %c184 = arith.constant 184 : index
    %c0_3 = arith.constant 0 : index
    %2 = vector.load %arg2[%c184, %c0_3] : memref<208x128xf32, #tpu.memory_space<vmem>>, vector<1x50xf32>
    %cst = arith.constant dense<0.000000e+00> : vector<8x50xf32>
    %3 = tpu.matmul %0, %1, %cst {dimension_numbers = #tpu.dot_dimension_numbers<[1], [0], [0], [1], [0, 0, 1, 1], [], []>} : vector<8x108xf32>, vector<108x50xf32>, vector<8x50xf32> -> vector<8x50xf32>
    %4 = vector.broadcast %2 : vector<1x50xf32> to vector<8x50xf32>
    %5 = arith.addf %3, %4 : vector<8x50xf32>
    %cst_4 = arith.constant 0.000000e+00 : f32
    %6 = vector.broadcast %cst_4 : f32 to vector<8x50xf32>
    %7 = arith.maximumf %5, %6 : vector<8x50xf32>
    %c112 = arith.constant 112 : index
    %c0_5 = arith.constant 0 : index
    %8 = vector.load %arg2[%c112, %c0_5] : memref<208x128xf32, #tpu.memory_space<vmem>>, vector<50x10xf32>
    %c192 = arith.constant 192 : index
    %c0_6 = arith.constant 0 : index
    %9 = vector.load %arg2[%c192, %c0_6] : memref<208x128xf32, #tpu.memory_space<vmem>>, vector<1x10xf32>
    %cst_7 = arith.constant dense<0.000000e+00> : vector<8x10xf32>
    %10 = tpu.matmul %7, %8, %cst_7 {dimension_numbers = #tpu.dot_dimension_numbers<[1], [0], [0], [1], [0, 0, 1, 1], [], []>} : vector<8x50xf32>, vector<50x10xf32>, vector<8x10xf32> -> vector<8x10xf32>
    %11 = vector.broadcast %9 : vector<1x10xf32> to vector<8x10xf32>
    %12 = arith.addf %10, %11 : vector<8x10xf32>
    %cst_8 = arith.constant 0.000000e+00 : f32
    %13 = vector.broadcast %cst_8 : f32 to vector<8x10xf32>
    %14 = arith.maximumf %12, %13 : vector<8x10xf32>
    %c168 = arith.constant 168 : index
    %c0_9 = arith.constant 0 : index
    %15 = vector.load %arg2[%c168, %c0_9] : memref<208x128xf32, #tpu.memory_space<vmem>>, vector<10x2xf32>
    %c200 = arith.constant 200 : index
    %c0_10 = arith.constant 0 : index
    %16 = vector.load %arg2[%c200, %c0_10] : memref<208x128xf32, #tpu.memory_space<vmem>>, vector<1x2xf32>
    %cst_11 = arith.constant dense<0.000000e+00> : vector<8x2xf32>
    %17 = tpu.matmul %14, %15, %cst_11 {dimension_numbers = #tpu.dot_dimension_numbers<[1], [0], [0], [1], [0, 0, 1, 1], [], []>} : vector<8x10xf32>, vector<10x2xf32>, vector<8x2xf32> -> vector<8x2xf32>
    %18 = vector.broadcast %16 : vector<1x2xf32> to vector<8x2xf32>
    %19 = arith.addf %17, %18 : vector<8x2xf32>
    %cst_12 = arith.constant 0.000000e+00 : f32
    %20 = vector.broadcast %cst_12 : f32 to vector<8x2xf32>
    %21 = arith.maximumf %19, %20 : vector<8x2xf32>
    %c0_13 = arith.constant 0 : index
    %c0_14 = arith.constant 0 : index
    %22 = vector.load %arg3[%c0_13, %c0_14] : memref<8x2xf32, #tpu.memory_space<vmem>>, vector<8x2xf32>
    tpu.vector_store %arg3[%c0_13, %c0_14], %21 {strides = array<i32>} : memref<8x2xf32, #tpu.memory_space<vmem>>, vector<8x2xf32>,
    return
  }
  func.func @transform_0(%arg0: i32) -> (i32, i32) {
    %c0_i32 = arith.constant 0 : i32
    %c0_i32_0 = arith.constant 0 : i32
    return %arg0, %c0_i32 : i32, i32
  }
  func.func @transform_1(%arg0: i32) -> (i32, i32) {
    %c0_i32 = arith.constant 0 : i32
    %c0_i32_0 = arith.constant 0 : i32
    %c0_i32_1 = arith.constant 0 : i32
    return %c0_i32, %c0_i32_0 : i32, i32
  }
  func.func @transform_2(%arg0: i32) -> (i32, i32) {
    %c0_i32 = arith.constant 0 : i32
    %c0_i32_0 = arith.constant 0 : i32
    return %arg0, %c0_i32 : i32, i32
  }
}

</mosaic_0001>

<bundles_post_ra>
// kernel: net_adult_forward.1
= control target key start
LH: loop header
LB: loop body
LE: loop exit
PB: predicated region body
PF: predicated region fallthrough
CT: control target
= control target key end

     0   :  { %7 = vsyncpa [#allocation3], 0  ;;  %s578_s0 = inlined_call_operand.hbm [shape: f32[8,108], index: 0, kind: input, shape index: {}]   ;;  %s579_s1 = inlined_call_operand.hbm [shape: f32[208,128], index: 1, kind: input, shape index: {}]   ;;  %s580_s2 = inlined_call_operand.vmem [shape: f32[8,2], index: 2, kind: output, shape index: {}]  }
   0x1   :  { %8 = vsyncpa [#allocation5], 0  ;;  %s501_s9 = smov [#allocation2]   ;;  %s502_s11 = smov [#allocation4]  }
   0x2   :  { %s15_s10 = sshll.u32 %s501_s9, 4  ;;  %s24_s12 = sshll.u32 %s502_s11, 4  ;;  %s16_s10 = int_to_ptr.vmem [resolvable:$true] %s15_s10  ;;  %s524_s12 = int_to_ptr.vmem [resolvable:$true] %s24_s12 }
   0x3   :  { %s453_s15 = scalar_lea.hbm %s578_s0, 128 }
   0x4   :  { %p454_p0 = scmp.ne.s32.totalorder %s578_s0, %s453_s15  ;;  %p457_p1 = scmp.lt.u32.totalorder %s453_s15, %s578_s0 }
   0x6   :  { %p459_p2 = pnand %p457_p1, %p454_p0 }
   0x8   :  { %462 = shalt.err (!%p459_p2)
}
   0x9   :  { %s463_s20 = scalar_lea.vmem %s16_s10, 128  ;;  %p468_p4 = scmp.lt.s32.totalorder %s16_s10, %s16_s10 }
   0xa   :  { %p464_p3 = scmp.ne.s32.totalorder %s16_s10, %s463_s20  ;;  %p469_p5 = scmp.lt.s32.totalorder %s463_s20, %s463_s20 }
   0xc   :  { %p470_p6 = por %p469_p5, %p468_p4 }
   0xe   :  { %p471_p7 = pnand %p470_p6, %p464_p3 }
  0x10   :  { %474 = shalt.err (!%p471_p7)
}
  0x11   :  { %18 = dma.hbm_to_vmem [thread:$0]  %s578_s0, 128, %s16_s10, [#allocation3]  }
  0x12   :  { %s475_s25 = scalar_lea.hbm %s579_s1, 3328 }
  0x13   :  { %p476_p8 = scmp.ne.s32.totalorder %s579_s1, %s475_s25  ;;  %p479_p9 = scmp.lt.u32.totalorder %s475_s25, %s579_s1 }
  0x15   :  { %p481_p10 = pnand %p479_p9, %p476_p8 }
  0x17   :  { %484 = shalt.err (!%p481_p10)
}
  0x18   :  { %s485_s30 = scalar_lea.vmem %s524_s12, 3328  ;;  %p490_p12 = scmp.lt.s32.totalorder %s524_s12, %s524_s12 }
  0x19   :  { %p486_p11 = scmp.ne.s32.totalorder %s524_s12, %s485_s30  ;;  %p491_p13 = scmp.lt.s32.totalorder %s485_s30, %s485_s30 }
  0x1b   :  { %p492_p0 = por %p491_p13, %p490_p12 }
  0x1d   :  { %p493_p1 = pnand %p492_p0, %p486_p11 }
  0x1f   :  { %496 = shalt.err (!%p493_p1)
}
  0x20   :  { %s503_s0 = smov 128   ;;  %s504_s3 = smov 8  }
  0x21   :  { %30 = dma.hbm_to_vmem [thread:$0]  %s579_s1, 3328, %s524_s12, [#allocation5], %s503_s0, %s503_s0, %s504_s3  }
  0x22   :  { %497 = dma.done.wait [#allocation3], 128  }
  0x23   :  { %498 = vsyncadd [#allocation3], 4294967168 }
  0x24   :  { %499 = dma.done.wait [#allocation5], 3328  }
  0x25   :  { %500 = vsyncadd [#allocation5], 4294963968  ;;  %v505_v0 = vmov 0.0|0.0   ;;  %vm506_vm0 = vmmov 0   ;;  %v507_v1 = vmov 0.0   ;;  %v38_v2 = vld [vmem:[#allocation4] sm:$0xff] }
  0x26   :  { %410 = vmatprep.subr.bf16.mxu0 %v505_v0  ;;  %432 = vmatprep.subr.bf16.mxu1 %v505_v0  ;;  %v39_v3 = vld [vmem:[#allocation4 + $0x8] sm:$0xff]  ;;  %v40_v4 = vld [vmem:[#allocation4 + $0x10] sm:$0xff]  ;;  %v41_v6 = vld [vmem:[#allocation4 + $0x18] sm:$0xff]  ;;  %vm61_vm1 = vcmask 1043456   ;;  %vm508_vm2 = vmmov 1   ;;  %vm57_vm4 = vcmask 883712  }
  0x27   :  { %383 = vmatprep.mubr.msk.f32.mxu0 %vm506_vm0, %v507_v1  ;;  %400 = vmatprep.mubr.msk.f32.mxu1 %vm506_vm0, %v507_v1  ;;  %v411_v5 = vpack.c.bf16 %v39_v3, %v38_v2  ;;  %v414_v7 = vpack.c.bf16 %v41_v6, %v40_v4  ;;  %v42_v8 = vld [vmem:[#allocation4 + $0x20] sm:$0xff]  ;;  %v43_v9 = vld [vmem:[#allocation4 + $0x28] sm:$0xff]  ;;  %v136_v10 = vld [vmem:[#allocation4 + $0x70] sm:$0xff]  ;;  %vm152_vm5 = vcmask 1041408   ;;  %vm148_vm6 = vcmask 408576  }
  0x28   :  { %v137_v11 = vld [vmem:[#allocation4 + $0x78] sm:$0xff]  ;;  %v138_v12 = vld [vmem:[#allocation4 + $0x80] sm:$0xff]  ;;  %v139_v14 = vld [vmem:[#allocation4 + $0x88] sm:$0xff]  ;;  %v417_v15 = vpack.c.bf16 %v43_v9, %v42_v8  ;;  %vm234_vm8 = vcmask 80896   ;;  %vm312_vm9 = vcmask 15360  }
  0x29   :  { %412 = vmatpush3.bf16.msra.mxu0 %v411_v5  ;;  %v433_v13 = vpack.c.bf16 %v137_v11, %v136_v10  ;;  %v44_v16 = vld [vmem:[#allocation4 + $0x30] sm:$0xff]  ;;  %v45_v17 = vld [vmem:[#allocation4 + $0x38] sm:$0xff]  ;;  %v436_v18 = vpack.c.bf16 %v139_v14, %v138_v12  ;;  %v46_v20 = vld [vmem:[#allocation4 + $0x40] sm:$0xff] }
  0x2a   :  { %413 = vmatprep.subr.bf16.mxu0 %v505_v0  ;;  %v420_v19 = vpack.c.bf16 %v45_v17, %v44_v16  ;;  %v47_v21 = vld [vmem:[#allocation4 + $0x48] sm:$0xff]  ;;  %v48_v23 = vld [vmem:[#allocation4 + $0x50] sm:$0xff]  ;;  %v49_v24 = vld [vmem:[#allocation4 + $0x58] sm:$0xff] }
  0x2b   :  { %434 = vmatpush3.bf16.msra.mxu1 %v433_v13  ;;  %v423_v22 = vpack.c.bf16 %v47_v21, %v46_v20  ;;  %v426_v25 = vpack.c.bf16 %v49_v24, %v48_v23  ;;  %v50_v26 = vld [vmem:[#allocation4 + $0x60] sm:$0xff]  ;;  %v51_v27 = vld [vmem:[#allocation4 + $0x68] sm:$0xf]  ;;  %vm430_vm3 = vmpackc.low %vm61_vm1, %vm508_vm2 }
  0x2c   :  { %435 = vmatprep.subr.bf16.mxu1 %v505_v0  ;;  %v429_v28 = vpack.c.bf16 %v51_v27, %v50_v26  ;;  %v37_v29 = vld [vmem:[#allocation2] sm:$0xff]  ;;  %v140_v30 = vld [vmem:[#allocation4 + $0x90] sm:$0xff]  ;;  %v142_v33 = vld [vmem:[#allocation4 + $0xa0] sm:$0x3] }
  0x2d   :  { %415 = vmatpush3.bf16.msra.mxu0 %v414_v7  ;;  %v141_v31 = vld [vmem:[#allocation4 + $0x98] sm:$0xff]  ;;  %vm443_vm7 = vmpackc.low %vm152_vm5, %vm508_vm2  ;;  %v227_v39 = vld [vmem:[#allocation4 + $0xa8] sm:$0xff] }
  0x2e   :  { %416 = vmatprep.subr.bf16.mxu0 %v505_v0  ;;  %v439_v32 = vpack.c.bf16 %v141_v31, %v140_v30  ;;  %v320_v34 = vld [vmem:[#allocation4 + $0xb8] ss:$0 sm:$0xff]  ;;  %v228_v40 = vld [vmem:[#allocation4 + $0xb0] sm:$0x3]  ;;  %v323_v42 = vld [vmem:[#allocation4 + $0xc0] ss:$0 sm:$0xff] }
  0x2f   :  { %437 = vmatpush3.bf16.msra.mxu1 %v436_v18  ;;  %v442_v41 = vpack.c.bf16 %v228_v40, %v227_v39  ;;  %v326_v47 = vld [vmem:[#allocation4 + $0xc8] ss:$0 sm:$0xff] }
  0x30   :  { %438 = vmatprep.subr.bf16.mxu1 %v505_v0 }
  0x31   :  { %418 = vmatpush3.bf16.msra.mxu0 %v417_v15 }
  0x32   :  { %419 = vmatprep.subr.bf16.mxu0 %v505_v0 }
  0x33   :  { %440 = vmatpush3.bf16.msra.mxu1 %v439_v32 }
  0x34   :  { %398 = vmatprep.subr.mxu1 %v507_v1 }
  0x35   :  { %421 = vmatpush3.bf16.msra.mxu0 %v420_v19 }
  0x36   :  { %422 = vmatprep.subr.bf16.mxu0 %v505_v0 }
  0x37   :  { %399 = vmatpush3.msk.msra.mxu1 %vm152_vm5, %v142_v33 }
  0x38   :  { %441 = vmatprep.subr.bf16.mxu1 %v505_v0 }
  0x39   :  { %424 = vmatpush3.bf16.msra.mxu0 %v423_v22 }
  0x3a   :  { %425 = vmatprep.subr.bf16.mxu0 %v505_v0 }
  0x3d   :  { %427 = vmatpush3.bf16.msra.mxu0 %v426_v25 }
  0x3e   :  { %428 = vmatprep.subr.bf16.mxu0 %v505_v0 }
  0x41   :  { %431 = vmatpush3.bf16.msk.msra.mxu0 %vm430_vm3, %v429_v28 }
  0x44   :  { %384 = vmatmul.mubr.msk.f32.vlgmr.msra.gmra.mrb[0].mxu0 %vm57_vm4, %v37_v29 }
 0x117   :  { %v131_v35 = vpop.f32.mrb[0].mxu0 }
 0x118   :  { %v132_v36 = vadd.f32 %v320_v34, %v131_v35  ;;  %v385_v37 = vpop.f32.mrb[1].mxu0 }
 0x11a   :  { %v135_v38 = vmax.f32 %v132_v36, 0.0 }
 0x11c   :  { %401 = vmatmul.mubr.msk.f32.vlgmr.msra.gmra.mrb[0].mxu1 %vm148_vm6, %v135_v38 }
 0x11d   :  { %407 = vmatprep.mubr.msk.f32.mxu1 %vm506_vm0, %v507_v1  ;;  %444 = vmatpush3.bf16.msk.msra.mxu1 %vm443_vm7, %v442_v41 }
 0x1ef   :  { %v222_v43 = vpop.f32.mrb[0].mxu1 }
 0x1f0   :  { %v223_v44 = vadd.f32 %v323_v42, %v222_v43  ;;  %v402_v45 = vpop.f32.mrb[1].mxu1 }
 0x1f2   :  { %v226_v46 = vmax.f32 %v223_v44, 0.0 }
 0x1f4   :  { %408 = vmatmul.mubr.msk.f32.vlgmr.msra.gmra.mrb[2].mxu1 %vm234_vm8, %v226_v46 }
 0x2c7   :  { %v307_v48 = vpop.f32.mrb[2].mxu1 }
 0x2c8   :  { %v308_v49 = vadd.f32 %v326_v47, %v307_v48  ;;  %v409_v50 = vpop.f32.mrb[3].mxu1 }
 0x2ca   :  { %v311_v51 = vmax.f32 %v308_v49, 0.0 }
 0x2cc   :  { %313 = vst.msk [vmem:[%s580_s2] sm:$0xff] %vm312_vm9, %v311_v51 }
 0x2cd   :  { %318 = vsyncpa [#allocation3], 1 }
 0x2ce   :  { %319 = vsyncpa [#allocation5], 1 }

</bundles_post_ra>
